<compile_context>
chip_gen: v7x
topology: tpu7x:2x2x1
jax: 0.10.0
libtpu: 0.0.40
codegen_flags: <defaults>
</compile_context>

<pallas_src>
import functools

import jax
import jax.numpy as jnp
from jax import lax
from jax.experimental import pallas as pl
from jax.experimental.pallas import tpu as pltpu


# ----------------------------------------------------------------------------
# Sizing helpers
# ----------------------------------------------------------------------------
def _round_up(x: int, m: int) -> int:
    return ((x + m - 1) // m) * m


def _sublane_multiple(dtype) -> int:
    """Sublane packing for a dtype: 8 for 32-bit, 16 for 16-bit, 32 for 8-bit."""
    itemsize = jnp.dtype(dtype).itemsize
    return max(8, 32 // max(itemsize, 1))


def _vmem_budget_and_limit():
    """Generation-aware (tile budget, vmem_limit_bytes).

    v5e/v6e (128 MiB physical VMEM): 48 MiB double-buffered budget, 96 MiB limit.
    v7x (64 MiB) or unknown:          24 MiB budget, 48 MiB limit.
    """
    cap = None
    try:
        cap = getattr(pltpu.get_tpu_info(), "vmem_capacity_bytes", None)
    except Exception:  # no TPU query available -> be conservative
        cap = None
    if cap is not None and cap >= (96 << 20):
        return 48 << 20, 96 << 20
    return 24 << 20, 48 << 20


def _padded_row_bytes(L, D, in_dtype, out_dtype) -> int:
    """Per-G-row VMEM bytes: padded, double-buffered input + output + f32 temp."""
    in_item = jnp.dtype(in_dtype).itemsize
    out_item = jnp.dtype(out_dtype).itemsize
    l_pad = _round_up(L, _sublane_multiple(in_dtype))
    d_pad = _round_up(D, 128)
    in_bytes = 2 * l_pad * d_pad * in_item            # double-buffered input tile
    f32_tmp = l_pad * d_pad * 4 if in_item < 4 else 0  # f32 working copy (narrow in)
    out_bytes = 2 * d_pad * out_item                   # double-buffered output tile
    return in_bytes + f32_tmp + out_bytes


def _pick_tg(G, L, D, in_dtype, out_dtype, vmem_budget_bytes) -> int:
    """G-axis tile: largest that fits the budget, >=2 grid steps when splittable.

    Returns 0 if even a minimal-row block exceeds the budget (-> L-tiled fallback).
    """
    per_row = _padded_row_bytes(L, D, in_dtype, out_dtype)
    align = _sublane_multiple(out_dtype)  # tg is the sublane axis of the (tg, D) output
    tg = (vmem_budget_bytes // max(per_row, 1)) // align * align
    if tg < align:
        return 0
    if G <= align:
        return G  # single full-extent block (legal); cannot split further
    # Guarantee >= 2 grid steps: shards the "parallel" axis across v7x's 2 TCs
    # and keeps the double-buffered pipeline busy on all generations.
    half = _round_up(pl.cdiv(G, 2), align)
    if half >= G:
        half = max(align, ((G - 1) // align) * align)  # largest aligned value < G
    return min(tg, half)


def _pick_tl(L, D, tg, in_dtype, out_dtype, vmem_budget_bytes) -> int:
    """L-axis tile for the accumulator fallback."""
    in_item = jnp.dtype(in_dtype).itemsize
    out_item = jnp.dtype(out_dtype).itemsize
    sub = _sublane_multiple(in_dtype)
    d_pad = _round_up(D, 128)
    fixed = tg * d_pad * 4 + 2 * tg * d_pad * out_item  # f32 acc scratch + output
    avail = max(vmem_budget_bytes - fixed, 1)
    tl = avail // max(2 * tg * d_pad * in_item, 1)      # double-buffered input tile
    tl = max(sub, (tl // sub) * sub)
    return min(tl, _round_up(L, sub))


# ----------------------------------------------------------------------------
# Kernels
# ----------------------------------------------------------------------------
def _mean_seq_kernel(x_ref, o_ref, *, inv_l):
    # x_ref: (TG, L, D) VMEM tile; o_ref: (TG, D) VMEM tile.
    s = jnp.sum(x_ref[...], axis=1, dtype=jnp.float32)   # XLU sublane reduce in f32
    o_ref[...] = (s * jnp.float32(inv_l)).astype(o_ref.dtype)


def _mean_seq_acc_kernel(x_ref, o_ref, acc_ref, *, inv_l, l_total):
    # x_ref: (TG, TL, D); o_ref: (TG, D); acc_ref: (TG, D) f32 scratch.
    li = pl.program_id(1)

    @pl.when(li == 0)
    def _():
        acc_ref[...] = jnp.zeros_like(acc_ref)

    x = x_ref[...].astype(jnp.float32)
    tl = x_ref.shape[1]
    if l_total % tl != 0:  # static check: mask the padded tail of the last L block
        idx = lax.broadcasted_iota(jnp.int32, x_ref.shape, 1)
        x = jnp.where(li * tl + idx < l_total, x, 0.0)
    acc_ref[...] += jnp.sum(x, axis=1)

    @pl.when(li == pl.num_programs(1) - 1)
    def _():
        o_ref[...] = (acc_ref[...] * jnp.float32(inv_l)).astype(o_ref.dtype)


# ----------------------------------------------------------------------------
# Wrapper
# ----------------------------------------------------------------------------
def _mean_over_seq_3d(x, *, vmem_budget_bytes=None, vmem_limit_bytes=None):
    """x: (G, L, D) -> (G, D), mean over axis 1, computed in a Pallas kernel."""
    G, L, D = x.shape
    out_dtype = x.dtype
    default_budget, default_limit = _vmem_budget_and_limit()
    budget = default_budget if vmem_budget_bytes is None else vmem_budget_bytes
    limit = default_limit if vmem_limit_bytes is None else vmem_limit_bytes
    inv_l = 1.0 / float(L)

    tg = _pick_tg(G, L, D, x.dtype, out_dtype, budget)

    if tg > 0:
        # Fast path: whole L in one block, tile only G.
        return pl.pallas_call(
            functools.partial(_mean_seq_kernel, inv_l=inv_l),
            out_shape=jax.ShapeDtypeStruct((G, D), out_dtype),
            grid_spec=pltpu.PrefetchScalarGridSpec(
                num_scalar_prefetch=0,
                grid=(pl.cdiv(G, tg),),
                in_specs=[pl.BlockSpec((tg, L, D), lambda g: (g, 0, 0))],
                out_specs=pl.BlockSpec((tg, D), lambda g: (g, 0)),
            ),
            compiler_params=pltpu.CompilerParams(
                dimension_semantics=("parallel",),
                vmem_limit_bytes=limit,
            ),
        )(x)

    # Fallback: even a minimal-row block exceeds the budget (huge L*D).
    # Tile L with an f32 accumulator; L axis is a reduction ("arbitrary").
    align = _sublane_multiple(out_dtype)
    tg = G if G < align else align
    tl = _pick_tl(L, D, tg, x.dtype, out_dtype, budget)
    return pl.pallas_call(
        functools.partial(_mean_seq_acc_kernel, inv_l=inv_l, l_total=L),
        out_shape=jax.ShapeDtypeStruct((G, D), out_dtype),
        grid_spec=pltpu.PrefetchScalarGridSpec(
            num_scalar_prefetch=0,
            grid=(pl.cdiv(G, tg), pl.cdiv(L, tl)),
            in_specs=[pl.BlockSpec((tg, tl, D), lambda g, l: (g, l, 0))],
            out_specs=pl.BlockSpec((tg, D), lambda g, l: (g, 0)),
            scratch_shapes=[pltpu.VMEM((tg, D), jnp.float32)],
        ),
        compiler_params=pltpu.CompilerParams(
            dimension_semantics=("parallel", "arbitrary"),
            vmem_limit_bytes=limit,
        ),
    )(x)


class SentencesEmbeddings:
    """JAX/Pallas port of the PyTorch SentencesEmbeddings module."""

    def __init__(self, maxlen: int, use_att: int, w2v_dim: int):
        self.use_att = use_att
        self.w2v_dim = w2v_dim
        self.maxlen = maxlen

    def __call__(self, sent, mask=None):
        if self.use_att == 0:
            if sent.ndim == 3:
                # (B, L, D) -> mean over axis 1 -> (B, D)
                return _mean_over_seq_3d(sent)
            elif sent.ndim == 4:
                # (B, N, L, D) -> mean over axis 2 -> (B, N, D)
                B, N, L, D = sent.shape
                flat = sent.reshape(B * N, L, D)
                return _mean_over_seq_3d(flat).reshape(B, N, D)
            else:
                raise ValueError("expected 3D or 4D input")
        else:
            # TODO(synk): self.att is never defined in the reference __init__;
            # the attention branch is not executable and thus not implemented.
            raise NotImplementedError("use_att != 0 path has no defined self.att")


if __name__ == "__main__":
    key = jax.random.PRNGKey(0)
    k3, k4, k5, k6 = jax.random.split(key, 4)

    B, N, L, D = 2, 3, 8, 128  # small shapes; D kept lane-friendly (multiple of 128)
    mod = SentencesEmbeddings(maxlen=L, use_att=0, w2v_dim=D)

    # 3D case: (B, L, D) -> (B, D)
    sent3 = jax.random.normal(k3, (B, L, D), dtype=jnp.float32)
    out3 = mod(sent3)
    jax.block_until_ready(out3)
    ref3 = jnp.mean(sent3, axis=1)
    assert out3.shape == (B, D)
    assert jnp.allclose(out3, ref3, atol=1e-5, rtol=1e-5)

    # 4D case: (B, N, L, D) -> (B, N, D)
    sent4 = jax.random.normal(k4, (B, N, L, D), dtype=jnp.float32)
    out4 = mod(sent4)
    jax.block_until_ready(out4)
    ref4 = jnp.mean(sent4, axis=2)
    assert out4.shape == (B, N, D)
    assert jnp.allclose(out4, ref4, atol=1e-5, rtol=1e-5)

    # Lane/sublane-unfriendly shape (w2v-like dims): exercises masked stores.
    sent5 = jax.random.normal(k5, (4, 10, 100), dtype=jnp.float32)
    out5 = _mean_over_seq_3d(sent5)
    jax.block_until_ready(out5)
    assert jnp.allclose(out5, jnp.mean(sent5, axis=1), atol=1e-5, rtol=1e-5)

    # Force the L-tiled accumulator fallback with a tiny budget (covers the
    # masked-tail + multi-step accumulation path at a small shape).
    sent6 = jax.random.normal(k6, (5, 10, 100), dtype=jnp.float32)
    out6 = _mean_over_seq_3d(sent6, vmem_budget_bytes=64 << 10)
    jax.block_until_ready(out6)
    assert jnp.allclose(out6, jnp.mean(sent6, axis=1), atol=1e-5, rtol=1e-5)

    print("KERNEL_OK")
</pallas_src>

<mosaic_0001>
module attributes {stable_mosaic.version = 11 : i64} {
  func.func @_mean_seq_kernel(%arg0: i32, %arg1: memref<2x8x128xf32, #tpu.memory_space<vmem>>, %arg2: memref<2x128xf32, #tpu.memory_space<vmem>>) attributes {dimension_semantics = [#tpu.dimension_semantics<parallel>], iteration_bounds = array<i64: 1>, scalar_prefetch = 0 : i64, scratch_operands = 0 : i64, tpu.core_type = #tpu.core_type<tc>, window_params = [{transform_indices = @transform_0, window_bounds = array<i64: 2, 8, 128>}, {transform_indices = @transform_1, window_bounds = array<i64: 2, 128>}]} {
    %c0 = arith.constant 0 : index
    %c0_0 = arith.constant 0 : index
    %c0_1 = arith.constant 0 : index
    %0 = vector.load %arg1[%c0, %c0_0, %c0_1] : memref<2x8x128xf32, #tpu.memory_space<vmem>>, vector<2x8x128xf32>
    %cst = arith.constant dense<0.000000e+00> : vector<2x128xf32>
    %1 = vector.multi_reduction <add>, %0, %cst [1] : vector<2x8x128xf32> to vector<2x128xf32>
    %cst_2 = arith.constant 1.250000e-01 : f32
    %2 = vector.broadcast %cst_2 : f32 to vector<2x128xf32>
    %3 = arith.mulf %1, %2 : vector<2x128xf32>
    %c0_3 = arith.constant 0 : index
    %c0_4 = arith.constant 0 : index
    %4 = vector.load %arg2[%c0_3, %c0_4] : memref<2x128xf32, #tpu.memory_space<vmem>>, vector<2x128xf32>
    tpu.vector_store %arg2[%c0_3, %c0_4], %3 {strides = array<i32>} : memref<2x128xf32, #tpu.memory_space<vmem>>, vector<2x128xf32>,
    return
  }
  func.func @transform_0(%arg0: i32) -> (i32, i32, i32) {
    %c0_i32 = arith.constant 0 : i32
    %c0_i32_0 = arith.constant 0 : i32
    %c0_i32_1 = arith.constant 0 : i32
    return %arg0, %c0_i32, %c0_i32_0 : i32, i32, i32
  }
  func.func @transform_1(%arg0: i32) -> (i32, i32) {
    %c0_i32 = arith.constant 0 : i32
    %c0_i32_0 = arith.constant 0 : i32
    return %arg0, %c0_i32 : i32, i32
  }
}

</mosaic_0001>

<bundles_post_ra>
// kernel: tpu_custom_call.1
= control target key start
LH: loop header
LB: loop body
LE: loop exit
PB: predicated region body
PF: predicated region fallthrough
CT: control target
= control target key end

     0   :  { %6 = vsyncpa [#allocation3], 0  ;;  %s150_s0 = inlined_call_operand.hbm [shape: f32[2,8,128], index: 0, kind: input, shape index: {}]   ;;  %s151_s1 = inlined_call_operand.hbm [shape: f32[2,128], index: 1, kind: output, shape index: {}]  }
   0x1   :  { %7 = vsyncpa [#allocation4], 0  ;;  %s112_s6 = smov [#allocation2]   ;;  %s64_s10 = scalar_lea.hbm %s150_s0, 256 }
   0x2   :  { %s13_s7 = sshll.u32 %s112_s6, 4  ;;  %p65_p0 = scmp.ne.s32.totalorder %s150_s0, %s64_s10  ;;  %s14_s7 = int_to_ptr.vmem [resolvable:$true] %s13_s7 }
   0x3   :  { %p68_p1 = scmp.lt.u32.totalorder %s64_s10, %s150_s0 }
   0x5   :  { %p70_p2 = pnand %p68_p1, %p65_p0 }
   0x7   :  { %73 = shalt.err (!%p70_p2)
}
   0x8   :  { %s74_s15 = scalar_lea.vmem %s14_s7, 256  ;;  %p79_p4 = scmp.lt.s32.totalorder %s14_s7, %s14_s7 }
   0x9   :  { %p75_p3 = scmp.ne.s32.totalorder %s14_s7, %s74_s15  ;;  %p80_p5 = scmp.lt.s32.totalorder %s74_s15, %s74_s15 }
   0xb   :  { %p81_p6 = por %p80_p5, %p79_p4 }
   0xd   :  { %p82_p7 = pnand %p81_p6, %p75_p3 }
   0xf   :  { %85 = shalt.err (!%p82_p7)
}
  0x10   :  { %s113_s16 = smov 128   ;;  %s114_s17 = smov 8  }
  0x11   :  { %19 = dma.hbm_to_vmem [thread:$0]  %s150_s0, 256, %s14_s7, [#allocation3], %s113_s16, %s113_s16, %s114_s17  }
  0x12   :  { %108 = dma.done.wait [#allocation3], 256  }
  0x13   :  { %109 = vsyncadd [#allocation3], 4294967040  ;;  %v23_v0 = vld [vmem:[#allocation2] sm:$0xff]  ;;  %v24_v1 = vld [vmem:[#allocation2 + $0x8] sm:$0xff]  ;;  %s115_s20 = smov [#allocation5]   ;;  %vm41_vm0 = vcmask 1041409  }
  0x14   :  { %v25_v2 = vrot.slane %v23_v0, 4  ;;  %v31_v3 = vrot.slane %v24_v1, 4  ;;  %s51_s21 = sshll.u32 %s115_s20, 4  ;;  %s52_s21 = int_to_ptr.vmem [resolvable:$true] %s51_s21 }
  0x15   :  { %s86_s0 = scalar_lea.vmem %s52_s21, 32  ;;  %p91_p9 = scmp.lt.s32.totalorder %s52_s21, %s52_s21 }
  0x16   :  { %v26_v4 = vadd.f32 %v25_v2, %v23_v0  ;;  %v32_v5 = vadd.f32 %v31_v3, %v24_v1  ;;  %p87_p8 = scmp.ne.s32.totalorder %s52_s21, %s86_s0  ;;  %p92_p10 = scmp.lt.s32.totalorder %s86_s0, %s86_s0 }
  0x18   :  { %v27_v6 = vrot.slane %v26_v4, 2  ;;  %v33_v7 = vrot.slane %v32_v5, 2  ;;  %p93_p11 = por %p92_p10, %p91_p9 }
  0x1a   :  { %v28_v8 = vadd.f32 %v27_v6, %v26_v4  ;;  %v34_v9 = vadd.f32 %v33_v7, %v32_v5  ;;  %p94_p12 = pnand %p93_p11, %p87_p8 }
  0x1c   :  { %v29_v10 = vrot.slane %v28_v8, 1  ;;  %v35_v11 = vrot.slane %v34_v9, 1 }
  0x1e   :  { %v30_v12 = vadd.f32 %v29_v10, %v28_v8  ;;  %v36_v13 = vadd.f32 %v35_v11, %v34_v9 }
  0x20   :  { %v37_v14 = vmul.f32 0.125, %v30_v12  ;;  %v38_v15 = vmul.f32 0.125, %v36_v13 }
  0x22   :  { %v42_v16 = vsel %vm41_vm0, %v38_v15, %v37_v14 }
  0x23   :  { %44 = vst [vmem:[#allocation5] sm:$0x3] %v42_v16 }
  0x24   :  { %97 = shalt.err (!%p94_p12)
}
  0x25   :  { %s98_s24 = scalar_lea.hbm %s151_s1, 32 }
  0x26   :  { %p99_p13 = scmp.ne.s32.totalorder %s151_s1, %s98_s24  ;;  %p102_p0 = scmp.lt.u32.totalorder %s98_s24, %s151_s1 }
  0x28   :  { %p104_p1 = pnand %p102_p0, %p99_p13 }
  0x2a   :  { %107 = shalt.err (!%p104_p1)
}
  0x2b   :  { %54 = dma.vmem_to_hbm [thread:$0]  %s52_s21, 32, %s151_s1, [#allocation4]  }
  0x2c   :  { %110 = dma.done.wait [#allocation4], 32  }
  0x2d   :  { %111 = vsyncadd [#allocation4], 4294967264 }
  0x2e   :  { %58 = vsyncpa [#allocation3], 1 }
  0x2f   :  { %59 = vsyncpa [#allocation4], 1 }

</bundles_post_ra>
